<compile_context>
chip_gen: v6e
topology: v6e:2x2x1
jax: 0.10.0
libtpu: 0.0.40
codegen_flags: <defaults>
</compile_context>

<pallas_src>
import functools
import math

import jax
import jax.numpy as jnp
import numpy as np
from jax.experimental import pallas as pl
from jax.experimental.pallas import tpu as pltpu

EPS = 1e-5


def res_conv_block_kernel(
    x_ref,                   # (R, L1)      f32  lane-folded input: row=(n,h), lane=w*Cin_p+c
    mhm1_ref, mhp1_ref,      # (R, 1)       f32  0/1 masks: a valid h-1 / h+1 row exists
    g1_ref, be1_ref,         # (1, L1)      f32  folded BN1 gamma / beta
    w1_off_ref,              # (2*L1, L2)   bf16 banded conv_1 weights, kh=0 & kh=2 taps stacked
    w1_ctr_ref,              # (L1, L2)     bf16 banded conv_1 weights, kh=1 tap
    b1_ref,                  # (1, L2)      f32  folded conv_1 bias
    g2_ref, be2_ref,         # (1, L2)      f32  folded BN2 gamma / beta
    w2_off_ref,              # (2*L2, L2)   bf16 banded conv_2 weights, kh=0 & kh=2 taps stacked
    w2cr_ref,                # (L2+L1, L2)  bf16 [conv_2 kh=1 tap ; residual 1x1 block-diag]
    b2r_ref,                 # (1, L2)      f32  folded (conv_2 bias + residual bias)
    o_ref,                   # (R, L2)      f32  lane-folded output
    *,
    inv_count,               # 1 / (N*H*W)
    c_pad_in, c_pad_out,     # padded channel counts (lane period of the channel fold)
    shift_prev, shift_next,  # sublane-roll shifts that fetch row h-1 / row h+1
):
    f32 = jnp.float32
    bf16 = jnp.bfloat16

    x = x_ref[...]
    mhm1 = mhm1_ref[...]
    mhp1 = mhp1_ref[...]

    def bn_relu(t, g, be, c_pad):
        # Training-mode BatchNorm2d over (N, H, W) per channel, one-pass f32
        # stats.  The per-channel fold over the W lane replicas is a log2(W)
        # lane-roll butterfly on the XLU (no MXU matvec, no (L,L) constants).
        csum = jnp.sum(t, axis=0, keepdims=True)
        csq = jnp.sum(t * t, axis=0, keepdims=True)
        lanes = t.shape[-1]
        step = c_pad
        while step < lanes:                       # unrolled at trace time
            csum = csum + pltpu.roll(csum, shift=step, axis=1)
            csq = csq + pltpu.roll(csq, shift=step, axis=1)
            step *= 2
        mean = csum * inv_count
        var = csq * inv_count - mean * mean
        scale = jax.lax.rsqrt(var + EPS) * g      # (1, L) lane-dense
        shift = be - mean * scale
        return jnp.maximum(t * scale + shift, 0.0)

    def h_taps(t):
        # Rows fetched from h-1 / h+1 via sublane roll (XLU) + 0/1 edge masks
        # (the masks encode the conv's zero padding at image top/bottom), then
        # packed lane-wise into one (R, 2L) bf16 operand -> a single K=2L MXU
        # contraction against the stacked kh=0 / kh=2 banded weights.
        up = pltpu.roll(t, shift=shift_prev, axis=0) * mhm1   # row r <- row r-1
        dn = pltpu.roll(t, shift=shift_next, axis=0) * mhp1   # row r <- row r+1
        return jnp.concatenate([up, dn], axis=1).astype(bf16)

    # normalize_1 + relu, conv_1 (W taps live inside the banded weights)
    xn = bn_relu(x, g1_ref[...], be1_ref[...], c_pad_in)
    y1 = jnp.dot(h_taps(xn), w1_off_ref[...], preferred_element_type=f32)
    y1 = y1 + jnp.dot(xn.astype(bf16), w1_ctr_ref[...], preferred_element_type=f32)
    y1 = y1 + b1_ref[...]

    # normalize_2 + relu, conv_2 with the residual 1x1 conv fused into the
    # center-tap contraction ([y1n | x] @ [W2_kh1 ; W_res], K = L2 + L1).
    y1n = bn_relu(y1, g2_ref[...], be2_ref[...], c_pad_out)
    y2 = jnp.dot(h_taps(y1n), w2_off_ref[...], preferred_element_type=f32)
    ctr = jnp.concatenate([y1n, x], axis=1).astype(bf16)
    y2 = y2 + jnp.dot(ctr, w2cr_ref[...], preferred_element_type=f32)
    # TODO(synk): nn.Dropout(0.2) is stochastic in train mode; eval-mode identity here.
    o_ref[...] = y2 + b2r_ref[...]


def _padded_channels(c, w, lanes=128):
    """Smallest c' >= c such that w * c' is a multiple of the 128-lane width."""
    step = lanes // math.gcd(w, lanes)
    return ((c + step - 1) // step) * step


def _detect_roll_shifts(rows):
    """Return (shift_prev, shift_next): non-negative sublane-roll shifts such that
    roll(t, shift_prev, axis=0)[r] == t[r-1] and roll(t, shift_next, axis=0)[r] == t[r+1]."""
    def probe_kernel(x_ref, o_ref):
        o_ref[...] = pltpu.roll(x_ref[...], shift=1, axis=0)

    vmem = pl.BlockSpec(memory_space=pltpu.MemorySpace.VMEM)
    x = jax.lax.broadcasted_iota(jnp.float32, (8, 128), 0)
    out = pl.pallas_call(
        probe_kernel,
        out_shape=jax.ShapeDtypeStruct((8, 128), jnp.float32),
        in_specs=[vmem], out_specs=vmem,
    )(x)
    first = float(out[0, 0])
    if first == 7.0:      # jnp.roll convention: out[r] = in[r-1]
        return 1, rows - 1
    if first == 1.0:      # opposite convention: out[r] = in[r+1]
        return rows - 1, 1
    raise AssertionError(f"unexpected pltpu.roll probe result: {first}")


def build_res_conv_block(params, input_shape):
    """One-time host-side parameter packing + a jitted NCHW->NCHW forward."""
    N, Cin, H, W = input_shape
    Cout = int(params["w1"].shape[0])
    assert W & (W - 1) == 0, "lane-roll BN fold assumes power-of-two W"
    Cin_p = _padded_channels(Cin, W)
    Cout_p = _padded_channels(Cout, W)
    L1, L2 = W * Cin_p, W * Cout_p
    R = N * H

    # ---------------- one-time host-side packing (numpy) ----------------
    def banded(wt, cin_p, cout_p):
        # (Cout, Cin, 3, 3) OIHW -> (3, W*cin_p, W*cout_p) banded per-kh weights.
        co, ci = wt.shape[0], wt.shape[1]
        wtp = np.zeros((cout_p, cin_p, 3, 3), np.float32)
        wtp[:co, :ci] = np.asarray(wt, np.float32)
        b = np.zeros((3, W * cin_p, W * cout_p), np.float32)
        for kh in range(3):
            for wo in range(W):
                for dx in (-1, 0, 1):
                    wi = wo + dx
                    if 0 <= wi < W:
                        b[kh, wi * cin_p:(wi + 1) * cin_p,
                          wo * cout_p:(wo + 1) * cout_p] = wtp[:, :, kh, dx + 1].T
        return b

    def fold_vec(v, cpad):
        vp = np.zeros((cpad,), np.float32)
        v = np.asarray(v, np.float32)
        vp[:v.shape[0]] = v
        return np.tile(vp, W).reshape(1, W * cpad)

    B1 = banded(params["w1"], Cin_p, Cout_p)           # (3, L1, L2)
    B2 = banded(params["w2"], Cout_p, Cout_p)          # (3, L2, L2)
    W1_off = np.concatenate([B1[0], B1[2]], axis=0)    # (2*L1, L2)  kh=0 ; kh=2
    W2_off = np.concatenate([B2[0], B2[2]], axis=0)    # (2*L2, L2)

    wr = np.zeros((Cout_p, Cin_p), np.float32)
    wr[:Cout, :Cin] = np.asarray(params["wr"], np.float32)[:, :, 0, 0]
    Br = np.zeros((L1, L2), np.float32)                # block-diagonal 1x1 residual
    for wi in range(W):
        Br[wi * Cin_p:(wi + 1) * Cin_p, wi * Cout_p:(wi + 1) * Cout_p] = wr.T
    W2_ctr_res = np.concatenate([B2[1], Br], axis=0)   # (L2 + L1, L2)

    g1_f, be1_f = fold_vec(params["bn1_g"], Cin_p), fold_vec(params["bn1_b"], Cin_p)
    g2_f, be2_f = fold_vec(params["bn2_g"], Cout_p), fold_vec(params["bn2_b"], Cout_p)
    b1_f = fold_vec(params["b1"], Cout_p)
    b2r_f = fold_vec(np.asarray(params["b2"]) + np.asarray(params["br"]), Cout_p)

    h_idx = np.arange(R) % H
    mhm1 = (h_idx > 0).astype(np.float32).reshape(R, 1)       # a valid h-1 row exists
    mhp1 = (h_idx < H - 1).astype(np.float32).reshape(R, 1)   # a valid h+1 row exists

    packed_np = (mhm1, mhp1, g1_f, be1_f, W1_off, B1[1], b1_f,
                 g2_f, be2_f, W2_off, W2_ctr_res, b2r_f)
    bf16 = jnp.bfloat16
    packed = (
        jnp.asarray(mhm1), jnp.asarray(mhp1),
        jnp.asarray(g1_f), jnp.asarray(be1_f),
        jnp.asarray(W1_off, bf16), jnp.asarray(B1[1], bf16), jnp.asarray(b1_f),
        jnp.asarray(g2_f), jnp.asarray(be2_f),
        jnp.asarray(W2_off, bf16), jnp.asarray(W2_ctr_res, bf16), jnp.asarray(b2r_f),
    )

    shift_prev, shift_next = _detect_roll_shifts(R)

    kernel = functools.partial(
        res_conv_block_kernel,
        inv_count=1.0 / (N * H * W),
        c_pad_in=Cin_p, c_pad_out=Cout_p,
        shift_prev=shift_prev, shift_next=shift_next)

    # VMEM limit from the real working set (inputs + output + headroom), not a
    # blanket 32 MiB (which is half of v7x's physical 64 MiB).
    arg_bytes = R * L1 * 4 + R * L2 * 4 + sum(a.size * a.itemsize for a in packed_np)
    vmem_limit = int(min(96 * 1024 * 1024, max(4 * 1024 * 1024, 8 * arg_bytes)))

    vmem = pl.BlockSpec(memory_space=pltpu.MemorySpace.VMEM)
    pallas_fn = pl.pallas_call(
        kernel,
        out_shape=jax.ShapeDtypeStruct((R, L2), jnp.float32),
        in_specs=[vmem] * (1 + len(packed)),
        out_specs=vmem,
        compiler_params=pltpu.CompilerParams(vmem_limit_bytes=vmem_limit),
    )

    @jax.jit
    def fwd(x_nchw, p):
        # NCHW -> NHWC -> channel pad -> lane-folded (N*H, W*Cin_p)
        x = jnp.transpose(x_nchw, (0, 2, 3, 1)).astype(jnp.float32)
        if Cin_p != Cin:
            x = jnp.pad(x, ((0, 0), (0, 0), (0, 0), (0, Cin_p - Cin)))
        x_f = x.reshape(R, L1)
        out_f = pallas_fn(x_f, *p)
        out = out_f.reshape(N, H, W, Cout_p)[..., :Cout]
        return jnp.transpose(out, (0, 3, 1, 2))       # back to NCHW

    return lambda x_nchw: fwd(x_nchw, packed)


def reference(x, params):
    """Pure-JAX NCHW reference mirroring the PyTorch forward (training-mode BN)."""
    def bn(t, g, b):
        mean = t.mean(axis=(0, 2, 3), keepdims=True)
        var = ((t - mean) ** 2).mean(axis=(0, 2, 3), keepdims=True)
        tn = (t - mean) / jnp.sqrt(var + EPS)
        return tn * g.reshape(1, -1, 1, 1) + b.reshape(1, -1, 1, 1)

    def conv(t, w, b, pad):
        y = jax.lax.conv_general_dilated(
            t, w, (1, 1), [(pad, pad), (pad, pad)],
            dimension_numbers=("NCHW", "OIHW", "NCHW"))
        return y + b.reshape(1, -1, 1, 1)

    x_ = jnp.maximum(bn(x, params["bn1_g"], params["bn1_b"]), 0.0)
    x_ = conv(x_, params["w1"], params["b1"], 1)
    x_ = jnp.maximum(bn(x_, params["bn2_g"], params["bn2_b"]), 0.0)
    x_ = conv(x_, params["w2"], params["b2"], 1)
    xr = conv(x, params["wr"], params["br"], 0)
    return xr + x_


if __name__ == "__main__":
    N, Cin, Cout, H, W = 2, 4, 8, 16, 16
    key = jax.random.PRNGKey(0)
    ks = jax.random.split(key, 12)

    x = jax.random.normal(ks[0], (N, Cin, H, W), jnp.float32)
    params = dict(
        w1=0.1 * jax.random.normal(ks[1], (Cout, Cin, 3, 3), jnp.float32),
        b1=0.1 * jax.random.normal(ks[2], (Cout,), jnp.float32),
        w2=0.1 * jax.random.normal(ks[3], (Cout, Cout, 3, 3), jnp.float32),
        b2=0.1 * jax.random.normal(ks[4], (Cout,), jnp.float32),
        wr=0.1 * jax.random.normal(ks[5], (Cout, Cin, 1, 1), jnp.float32),
        br=0.1 * jax.random.normal(ks[6], (Cout,), jnp.float32),
        bn1_g=1.0 + 0.1 * jax.random.normal(ks[7], (Cin,), jnp.float32),
        bn1_b=0.1 * jax.random.normal(ks[8], (Cin,), jnp.float32),
        bn2_g=1.0 + 0.1 * jax.random.normal(ks[9], (Cout,), jnp.float32),
        bn2_b=0.1 * jax.random.normal(ks[10], (Cout,), jnp.float32),
    )

    res_conv_block = build_res_conv_block(params, (N, Cin, H, W))   # one-time packing + jit
    out = jax.block_until_ready(res_conv_block(x))
    ref = jax.block_until_ready(reference(x, params))

    assert out.shape == (N, Cout, H, W)
    max_err = float(np.max(np.abs(np.asarray(out) - np.asarray(ref))))
    assert np.allclose(np.asarray(out), np.asarray(ref), atol=5e-2, rtol=5e-2), max_err
    print("KERNEL_OK")
</pallas_src>

<mosaic_0001>
module attributes {stable_mosaic.version = 11 : i64} {
  func.func @probe_kernel(%arg0: memref<8x128xf32, #tpu.memory_space<vmem>>, %arg1: memref<8x128xf32, #tpu.memory_space<vmem>>) attributes {dimension_semantics = [], scalar_prefetch = 0 : i64, scratch_operands = 0 : i64, tpu.core_type = #tpu.core_type<tc>} {
    %c0 = arith.constant 0 : index
    %c0_0 = arith.constant 0 : index
    %0 = vector.load %arg0[%c0, %c0_0] : memref<8x128xf32, #tpu.memory_space<vmem>>, vector<8x128xf32>
    %c1_i32 = arith.constant 1 : i32
    %1 = tpu.dynamic_rotate %0 by %c1_i32 dim 0 : vector<8x128xf32>, i32 -> vector<8x128xf32>
    %c0_1 = arith.constant 0 : index
    %c0_2 = arith.constant 0 : index
    %2 = vector.load %arg1[%c0_1, %c0_2] : memref<8x128xf32, #tpu.memory_space<vmem>>, vector<8x128xf32>
    tpu.vector_store %arg1[%c0_1, %c0_2], %1 {strides = array<i32>} : memref<8x128xf32, #tpu.memory_space<vmem>>, vector<8x128xf32>,
    return
  }
}

</mosaic_0001>

<bundles_post_ra>
// kernel: tpu_custom_call.1
= control target key start
LH: loop header
LB: loop body
LE: loop exit
PB: predicated region body
PF: predicated region fallthrough
CT: control target
= control target key end

     0   :  { %6 = vsyncpa [#allocation3], 0  ;;  %s103_s0 = inlined_call_operand.hbm [shape: f32[8,128], index: 0, kind: input, shape index: {}]   ;;  %s104_s1 = inlined_call_operand.hbm [shape: f32[8,128], index: 1, kind: output, shape index: {}]  }
   0x1   :  { %7 = vsyncpa [#allocation4], 0  ;;  %s85_s6 = smov [#allocation2]  }
   0x2   :  { %s14_s7 = sshll.u32 %s85_s6, 4  ;;  %s15_s7 = int_to_ptr.vmem [resolvable:$true] %s14_s7 }
   0x3   :  { %s49_s8 = scalar_lea.vmem %s15_s7, 128  ;;  %p54_p1 = scmp.lt.s32.totalorder %s15_s7, %s15_s7 }
   0x4   :  { %p50_p0 = scmp.ne.s32.totalorder %s15_s7, %s49_s8  ;;  %p55_p2 = scmp.lt.s32.totalorder %s49_s8, %s49_s8 }
   0x6   :  { %p56_p3 = por %p55_p2, %p54_p1 }
   0x8   :  { %p57_p4 = pnand %p56_p3, %p50_p0 }
   0xa   :  { %60 = shalt.err (!%p57_p4)
}
   0xb   :  { %17 = dma.hbm_to_vmem [thread:$0]  %s103_s0, 128, %s15_s7, [#allocation3]  }
   0xc   :  { %81 = dma.done.wait [#allocation3], 128  }
   0xd   :  { %82 = vsyncadd [#allocation3], 4294967168  ;;  %s86_s11 = smov [#allocation5]   ;;  %v21_v0 = vld [vmem:[#allocation2] sm:$0xff] }
   0xe   :  { %s30_s12 = sshll.u32 %s86_s11, 4  ;;  %v22_v1 = vrot.slane %v21_v0, 7  ;;  %s31_s12 = int_to_ptr.vmem [resolvable:$true] %s30_s12 }
   0xf   :  { %s61_s13 = scalar_lea.vmem %s31_s12, 128  ;;  %p66_p6 = scmp.lt.s32.totalorder %s31_s12, %s31_s12 }
  0x10   :  { %23 = vst [vmem:[#allocation5] sm:$0xff] %v22_v1  ;;  %p62_p5 = scmp.ne.s32.totalorder %s31_s12, %s61_s13  ;;  %p67_p7 = scmp.lt.s32.totalorder %s61_s13, %s61_s13 }
  0x12   :  { %p68_p8 = por %p67_p7, %p66_p6 }
  0x14   :  { %p69_p9 = pnand %p68_p8, %p62_p5 }
  0x16   :  { %72 = shalt.err (!%p69_p9)
}
  0x17   :  { %33 = dma.vmem_to_hbm [thread:$0]  %s31_s12, 128, %s104_s1, [#allocation4]  }
  0x18   :  { %83 = dma.done.wait [#allocation4], 128  }
  0x19   :  { %84 = vsyncadd [#allocation4], 4294967168 }
  0x1a   :  { %37 = vsyncpa [#allocation3], 1 }
  0x1b   :  { %38 = vsyncpa [#allocation4], 1 }

</bundles_post_ra>
